<compile_context>
chip_gen: v6e
topology: v6e:2x2x1
jax: 0.10.0
libtpu: 0.0.40
codegen_flags: <defaults>
</compile_context>

<pallas_src>
import numpy as np
import jax
import jax.numpy as jnp
from jax import lax
from jax.experimental import pallas as pl
from jax.experimental.pallas import tpu as pltpu


def _round_up(v, m):
    return -(-v // m) * m


def _pick_channel_tile(C, H, W, itemsize):
    """Largest divisor of C (<= 64) whose padded VMEM block stays under ~4 MiB."""
    padded_plane = _round_up(H, 8) * _round_up(W, 128) * itemsize
    cap = max(1, min(64, (4 * 1024 * 1024) // max(padded_plane, 1)))
    for ct in range(min(C, cap), 0, -1):
        if C % ct == 0:
            return ct
    return 1


def _reorg_kernel(x_ref, o_ref):
    # x_ref: (Ct, W, H) block, channel-major / column-major spatial: [c, w, h]
    # o_ref: (Ct, H, W) block of the NCHW output:                    [c, h, w]
    # One full-plane 2-D XLU transpose per channel; every output element is
    # written exactly once, so no zero-init pass is needed.
    ct = o_ref.shape[0]

    def body(c, carry):
        o_ref[c] = x_ref[c].T          # (W, H) -> (H, W) transpose on the XLU
        return carry

    lax.fori_loop(0, ct, body, 0, unroll=True)


def feature_reorganization(x, ori_shape, patch_size=1):
    """JAX/Pallas equivalent of FeatureReorganization.forward(x, ori_shape).

    out[n, c, ib*p + a, jb*p + b] = x[n, jb*(W//p) + ib, c*p*p + a*p + b]
    (the torch loop fills the H axis fastest and wraps the row index on W).
    """
    N, num_patches, dim = x.shape
    n2, C, H, W = ori_shape
    p = patch_size
    assert n2 == N and dim == p * p * C, "shape / ori_shape mismatch"
    # TODO(synk): the torch loop wraps the row index on W (not H) and raises on
    # ill-formed num_patches / W % p != 0; those error paths are not replicated.
    assert H == W, "wrap-on-W semantics of the torch loop require H == W"
    assert W % p == 0, "W must be divisible by patch_size"
    ip = W // p
    full = ip * ip
    assert num_patches <= full, "more patches than the output can hold"

    # Partial coverage: zero-pad the patch axis so the kernel writes every output
    # element exactly once (matches torch's zeros-initialized, partially-filled out).
    if num_patches < full:
        x = jnp.pad(x, ((0, 0), (0, full - num_patches), (0, 0)))

    # One XLA transpose to a channel-major, column-major-spatial layout:
    #   xcm[n, c, w, h] == value destined for out[n, c, h, w]
    x6 = x.reshape(N, ip, ip, C, p, p)                       # [n, jb, ib, c, a, b]
    xcm = jnp.transpose(x6, (0, 3, 1, 5, 2, 4)).reshape(N, C, W, W)

    itemsize = np.dtype(x.dtype).itemsize
    ct = _pick_channel_tile(C, H, W, itemsize)
    grid = (N, C // ct)

    padded_block = ct * _round_up(H, 8) * _round_up(W, 128) * itemsize
    vmem_limit = int(min(max(6 * padded_block, 4 * 1024 * 1024), 32 * 1024 * 1024))

    return pl.pallas_call(
        _reorg_kernel,
        out_shape=jax.ShapeDtypeStruct((N, C, H, W), x.dtype),
        grid=grid,
        in_specs=[pl.BlockSpec((None, ct, W, W), lambda n, c: (n, c, 0, 0))],
        out_specs=pl.BlockSpec((None, ct, H, W), lambda n, c: (n, c, 0, 0)),
        compiler_params=pltpu.CompilerParams(
            dimension_semantics=("parallel", "parallel"),
            vmem_limit_bytes=vmem_limit,
        ),
        cost_estimate=pl.CostEstimate(
            flops=0,
            transcendentals=0,
            bytes_accessed=2 * N * C * H * W * itemsize,
        ),
    )(xcm)


def _reference_torch_semantics(x, ori_shape, p):
    """NumPy transcription of the PyTorch forward loop (ground truth)."""
    N, num_patches, dim = x.shape
    _, C, H, W = ori_shape
    out = np.zeros(ori_shape, dtype=np.float32)
    i, j = 0, 0
    for k in range(num_patches):
        if i + p > W:
            i = 0
            j += p
        out[:, :, i:i + p, j:j + p] = x[:, k, :].reshape(N, C, p, p)
        i += p
    return out


if __name__ == "__main__":
    # FeatureReorganization has no learnable parameters (nothing to initialize).
    key = jax.random.PRNGKey(0)
    N, C, H, W = 2, 4, 16, 16
    p = 1                              # module default patch_size
    num_patches = (H // p) * (W // p)  # 256
    dim = p * p * C                    # 4

    x = jax.random.normal(key, (N, num_patches, dim), dtype=jnp.float32)

    fwd = jax.jit(feature_reorganization, static_argnums=(1, 2))

    # Full-coverage case (the typical patch-embedding-to-feature use).
    out = jax.block_until_ready(fwd(x, (N, C, H, W), p))
    ref = _reference_torch_semantics(np.asarray(x), (N, C, H, W), p)
    assert out.shape == (N, C, H, W), out.shape
    assert out.dtype == x.dtype, out.dtype
    np.testing.assert_allclose(np.asarray(out), ref, rtol=0, atol=0)

    # Partial-coverage case (remaining spatial positions stay zero, as in torch).
    x_part = x[:, :100, :]
    out_part = jax.block_until_ready(fwd(x_part, (N, C, H, W), p))
    ref_part = _reference_torch_semantics(np.asarray(x_part), (N, C, H, W), p)
    np.testing.assert_allclose(np.asarray(out_part), ref_part, rtol=0, atol=0)

    print("KERNEL_OK")
</pallas_src>

<mosaic_0001>
module attributes {stable_mosaic.version = 11 : i64} {
  func.func @_reorg_kernel(%arg0: i32, %arg1: i32, %arg2: memref<1x4x16x16xf32, #tpu.memory_space<vmem>>, %arg3: memref<1x4x16x16xf32, #tpu.memory_space<vmem>>) attributes {dimension_semantics = [#tpu.dimension_semantics<parallel>, #tpu.dimension_semantics<parallel>], iteration_bounds = array<i64: 2, 1>, scalar_prefetch = 0 : i64, scratch_operands = 0 : i64, tpu.core_type = #tpu.core_type<tc>, window_params = [{transform_indices = @transform_0, window_bounds = array<i64: 1, 4, 16, 16>}, {transform_indices = @transform_1, window_bounds = array<i64: 1, 4, 16, 16>}]} {
    %c0_i32 = arith.constant 0 : i32
    %c0 = arith.constant 0 : index
    %0 = arith.index_cast %c0_i32 : i32 to index
    %c0_0 = arith.constant 0 : index
    %c0_1 = arith.constant 0 : index
    %1 = vector.load %arg2[%c0, %0, %c0_0, %c0_1] : memref<1x4x16x16xf32, #tpu.memory_space<vmem>>, vector<1x1x16x16xf32>
    %2 = vector.shape_cast %1 : vector<1x1x16x16xf32> to vector<16x16xf32>
    %3 = tpu.transpose %2, [1, 0] : vector<16x16xf32> -> vector<16x16xf32>
    %c0_2 = arith.constant 0 : index
    %4 = arith.index_cast %c0_i32 : i32 to index
    %c0_3 = arith.constant 0 : index
    %c0_4 = arith.constant 0 : index
    %5 = vector.load %arg3[%c0_2, %4, %c0_3, %c0_4] : memref<1x4x16x16xf32, #tpu.memory_space<vmem>>, vector<1x1x16x16xf32>
    %6 = vector.shape_cast %5 : vector<1x1x16x16xf32> to vector<16x16xf32>
    %7 = vector.shape_cast %3 : vector<16x16xf32> to vector<1x1x16x16xf32>
    tpu.vector_store %arg3[%c0_2, %4, %c0_3, %c0_4], %7 {strides = array<i32>} : memref<1x4x16x16xf32, #tpu.memory_space<vmem>>, vector<1x1x16x16xf32>,
    %c1_i32 = arith.constant 1 : i32
    %c0_5 = arith.constant 0 : index
    %8 = arith.index_cast %c1_i32 : i32 to index
    %c0_6 = arith.constant 0 : index
    %c0_7 = arith.constant 0 : index
    %9 = vector.load %arg2[%c0_5, %8, %c0_6, %c0_7] : memref<1x4x16x16xf32, #tpu.memory_space<vmem>>, vector<1x1x16x16xf32>
    %10 = vector.shape_cast %9 : vector<1x1x16x16xf32> to vector<16x16xf32>
    %11 = tpu.transpose %10, [1, 0] : vector<16x16xf32> -> vector<16x16xf32>
    %c0_8 = arith.constant 0 : index
    %12 = arith.index_cast %c1_i32 : i32 to index
    %c0_9 = arith.constant 0 : index
    %c0_10 = arith.constant 0 : index
    %13 = vector.load %arg3[%c0_8, %12, %c0_9, %c0_10] : memref<1x4x16x16xf32, #tpu.memory_space<vmem>>, vector<1x1x16x16xf32>
    %14 = vector.shape_cast %13 : vector<1x1x16x16xf32> to vector<16x16xf32>
    %15 = vector.shape_cast %11 : vector<16x16xf32> to vector<1x1x16x16xf32>
    tpu.vector_store %arg3[%c0_8, %12, %c0_9, %c0_10], %15 {strides = array<i32>} : memref<1x4x16x16xf32, #tpu.memory_space<vmem>>, vector<1x1x16x16xf32>,
    %c2_i32 = arith.constant 2 : i32
    %c0_11 = arith.constant 0 : index
    %16 = arith.index_cast %c2_i32 : i32 to index
    %c0_12 = arith.constant 0 : index
    %c0_13 = arith.constant 0 : index
    %17 = vector.load %arg2[%c0_11, %16, %c0_12, %c0_13] : memref<1x4x16x16xf32, #tpu.memory_space<vmem>>, vector<1x1x16x16xf32>
    %18 = vector.shape_cast %17 : vector<1x1x16x16xf32> to vector<16x16xf32>
    %19 = tpu.transpose %18, [1, 0] : vector<16x16xf32> -> vector<16x16xf32>
    %c0_14 = arith.constant 0 : index
    %20 = arith.index_cast %c2_i32 : i32 to index
    %c0_15 = arith.constant 0 : index
    %c0_16 = arith.constant 0 : index
    %21 = vector.load %arg3[%c0_14, %20, %c0_15, %c0_16] : memref<1x4x16x16xf32, #tpu.memory_space<vmem>>, vector<1x1x16x16xf32>
    %22 = vector.shape_cast %21 : vector<1x1x16x16xf32> to vector<16x16xf32>
    %23 = vector.shape_cast %19 : vector<16x16xf32> to vector<1x1x16x16xf32>
    tpu.vector_store %arg3[%c0_14, %20, %c0_15, %c0_16], %23 {strides = array<i32>} : memref<1x4x16x16xf32, #tpu.memory_space<vmem>>, vector<1x1x16x16xf32>,
    %c3_i32 = arith.constant 3 : i32
    %c0_17 = arith.constant 0 : index
    %24 = arith.index_cast %c3_i32 : i32 to index
    %c0_18 = arith.constant 0 : index
    %c0_19 = arith.constant 0 : index
    %25 = vector.load %arg2[%c0_17, %24, %c0_18, %c0_19] : memref<1x4x16x16xf32, #tpu.memory_space<vmem>>, vector<1x1x16x16xf32>
    %26 = vector.shape_cast %25 : vector<1x1x16x16xf32> to vector<16x16xf32>
    %27 = tpu.transpose %26, [1, 0] : vector<16x16xf32> -> vector<16x16xf32>
    %c0_20 = arith.constant 0 : index
    %28 = arith.index_cast %c3_i32 : i32 to index
    %c0_21 = arith.constant 0 : index
    %c0_22 = arith.constant 0 : index
    %29 = vector.load %arg3[%c0_20, %28, %c0_21, %c0_22] : memref<1x4x16x16xf32, #tpu.memory_space<vmem>>, vector<1x1x16x16xf32>
    %30 = vector.shape_cast %29 : vector<1x1x16x16xf32> to vector<16x16xf32>
    %31 = vector.shape_cast %27 : vector<16x16xf32> to vector<1x1x16x16xf32>
    tpu.vector_store %arg3[%c0_20, %28, %c0_21, %c0_22], %31 {strides = array<i32>} : memref<1x4x16x16xf32, #tpu.memory_space<vmem>>, vector<1x1x16x16xf32>,
    %c4_i32 = arith.constant 4 : i32
    return
  }
  func.func @transform_0(%arg0: i32, %arg1: i32) -> (i32, i32, i32, i32) {
    %c0_i32 = arith.constant 0 : i32
    %c0_i32_0 = arith.constant 0 : i32
    %c0_i32_1 = arith.constant 0 : i32
    return %arg0, %arg1, %c0_i32, %c0_i32_0 : i32, i32, i32, i32
  }
  func.func @transform_1(%arg0: i32, %arg1: i32) -> (i32, i32, i32, i32) {
    %c0_i32 = arith.constant 0 : i32
    %c0_i32_0 = arith.constant 0 : i32
    %c0_i32_1 = arith.constant 0 : i32
    return %arg0, %arg1, %c0_i32, %c0_i32_0 : i32, i32, i32, i32
  }
}

</mosaic_0001>

<bundles_post_ra>
// kernel: feature_reorganization.1
= control target key start
LH: loop header
LB: loop body
LE: loop exit
PB: predicated region body
PF: predicated region fallthrough
CT: control target
= control target key end

     0   :  { %6 = vsyncpa [#allocation3], 0  ;;  %s697_s0 = inlined_call_operand.vmem [shape: f32[2,4,16,16], index: 0, kind: input, shape index: {}]   ;;  %s698_s1 = inlined_call_operand.hbm [shape: f32[2,4,16,16], index: 1, kind: output, shape index: {}]  }
   0x1   :  { %8 = vsyncpa [#allocation3 + $0x1], 0  ;;  %s575_s6 = smov 0   ;;  %s577_s7 = smov 0  }
   0x2   :  { %s579_s8 = smov 0   ;;  %s581_s9 = smov 0  }
   0x3   :  { %s583_s10 = smov 0   ;;  %s585_s11 = smov 0  }
   0x4 LB: > { %s399_s12 = sadd.s32 4294967295, %s560_s11   ;;  %s400_s13 = sadd.s32 4294967294, %s560_s11   ;;  %s560_s11 = sphi %s585_s11, %s14_s11   ;;  %s556_s10 = sphi %s583_s10, %s705_s10   ;;  %s552_s9 = sphi %s581_s9, %s704_s9   ;;  %s548_s8 = sphi %s579_s8, %s703_s8   ;;  %s544_s7 = sphi %s577_s7, %s702_s7   ;;  %s540_s6 = sphi %s575_s6, %s701_s6  }
   0x5   : > { %s26_s14 = sadd.s32 1, %s556_s10  ;;  %s63_s15 = sadd.s32 1, %s548_s8 }
   0x6   : > { %p28_p0 = scmp.ge.s32.totalorder %s26_s14, 2  ;;  %p73_p1 = scmp.ne.s32.totalorder %s548_s8, %s544_s7 }
   0x7   : > { %p74_p2 = scmp.eq.s32.totalorder %s399_s12, 1  ;;  %p79_p3 = scmp.ne.s32.totalorder %s544_s7, %s540_s6 }
   0x8   : > { %s707_s14 = smov (%p28_p0, %s26_s14), 0  ;;  %p80_p5 = scmp.eq.s32.totalorder %s400_s13, 1 }
   0x9   : > { %p615_p4 = por %p74_p2, %p73_p1  ;;  %s58_s17 = ssub.s32 %s556_s10, %s707_s14 }
   0xa   : > { %p403_p6 = scmp.ge.s32.totalorder %s560_s11, 1  ;;  %p61_p7 = scmp.eq.s32.totalorder %s58_s17, 0 }
   0xb   : > { %p622_p8 = por %p80_p5, %p79_p3  ;;  %p112_p9 = scmp.lt.s32.totalorder %s560_s11, 3 }
   0xc   : > { %s628_s19 = scalar_select %p61_p7, %s548_s8, %s63_s15  }
   0xd   : > { %p113_p10 = pnand %p403_p6, %p112_p9 }
   0xe   : > { %p138_p11 = scmp.lt.s32.totalorder (!%p113_p10), %s552_s9, 1  ;;  %s134_s25 = sand.u32 (!%p113_p10), 1, %s544_s7  }
   0xf   : > { %116 = sbr.rel (%p113_p10) target bundleno = 176 (0xb0), region = 24  ;;  %s404_s26 = sshll.u32 (!%p113_p10), %s134_s25, 6 }
  0x10   : > { %s136_s27 = scalar_lea.vmem (!%p113_p10), [#allocation2], %s404_s26  ;;  %s425_s28 = sshll.u32 (!%p113_p10), %s552_s9, 10 }
  0x11   : > { %s317_s29 = sshll.u32 (!%p113_p10), %s136_s27, 4  ;;  %s646_s3 = scalar_lea.hbm (!%p113_p10), %s698_s1, %s425_s28  ;;  %s648_s29 = int_to_ptr.vmem [resolvable:$true] %s317_s29 }
  0x12   : > { %s652_s4 = scalar_lea.sflag (!%p113_p10), [#allocation3], %s134_s25  ;;  %s484_s5 = scalar_lea.vmem (!%p113_p10), %s648_s29, 1024 }
  0x13   : > { %p485_p12 = scmp.ne.s32.totalorder (!%p113_p10), %s648_s29, %s484_s5 }
  0x14   : > { %s139_s20 = scalar_select %p138_p11, %s552_s9, 1  ;;  %vm183_vm0 = vcmask 130048  }
  0x15   : > { %p486_p13 = pnand %p485_p12, %p615_p4  ;;  %s562_s9 = smov [#allocation2]  }
  0x16   : > { %s424_s21 = sshll.u32 %s139_s20, 6  ;;  %s488_s12 = sshll.u32 %s562_s9, 4  ;;  %s489_s12 = int_to_ptr.vmem [resolvable:$false] %s488_s12 }
  0x17   : > { %s146_s24 = scalar_lea.vmem %s697_s0, %s424_s21  ;;  %p487_p0 = pneg %p486_p13 }
  0x18   : > { %v407_v0 = vld [vmem:[%s146_s24 + $0x10] sm:$0xff]  ;;  %v149_v1 = vld [vmem:[%s146_s24] sm:$0xff]  ;;  %v408_v2 = vld [vmem:[%s146_s24 + $0x18] sm:$0xff]  ;;  %s490_s13 = scalar_lea.vmem %s489_s12, 2048  ;;  %p491_p1 = scmp.lt.s32.totalorder %s648_s29, %s489_s12 }
  0x19   : > { %189 = vxpose.xlu1.b32.start [1/2] (short) (narrow) %v407_v0, 16  ;;  %151 = vxpose.xlu0.b32.start [1/2] (short) (narrow) %v149_v1, 16  ;;  %v150_v3 = vld [vmem:[%s146_s24 + $0x8] sm:$0xff]  ;;  %v415_v4 = vld [vmem:[%s146_s24 + $0x30] sm:$0xff]  ;;  %v411_v5 = vld [vmem:[%s146_s24 + $0x20] sm:$0xff]  ;;  %p492_p2 = scmp.lt.s32.totalorder %s490_s13, %s484_s5 }
  0x1a   : > { %v416_v6 = vld [vmem:[%s146_s24 + $0x38] sm:$0xff]  ;;  %v412_v7 = vld [vmem:[%s146_s24 + $0x28] sm:$0xff] }
  0x1b   : > { %p493_p3 = por %p492_p2, %p491_p1 }
  0x1d   : > { %190 = vxpose.xlu1.b32.end [2/2] (short) (narrow) %v408_v2, 16  ;;  %152 = vxpose.xlu0.b32.end [2/2] (short) (narrow) %v150_v3, 16  ;;  %p494_p5 = pnand %p493_p3, %p487_p0 }
  0x21   : > { %265 = vxpose.xlu1.b32.start [1/2] (short) (narrow) %v415_v4, 16  ;;  %227 = vxpose.xlu0.b32.start [1/2] (short) (narrow) %v411_v5, 16 }
  0x25   : > { %266 = vxpose.xlu1.b32.end [2/2] (short) (narrow) %v416_v6, 16  ;;  %228 = vxpose.xlu0.b32.end [2/2] (short) (narrow) %v412_v7, 16 }
  0x95   : > { %v205_v8 = vpop.trf.xlu1  ;;  %v167_v9 = vpop.trf.xlu0 }
  0x96   : > { %409 = vst.msk [vmem:[%s136_s27 + $0x10] sm:$0xff] %vm183_vm0, %v205_v8  ;;  %184 = vst.msk [vmem:[%s136_s27] sm:$0xff] %vm183_vm0, %v167_v9 }
  0x99   : > { %v206_v10 = vpop.trf.xlu1  ;;  %v168_v11 = vpop.trf.xlu0 }
  0x9a   : > { %410 = vst.msk [vmem:[%s136_s27 + $0x18] sm:$0xff] %vm183_vm0, %v206_v10  ;;  %185 = vst.msk [vmem:[%s136_s27 + $0x8] sm:$0xff] %vm183_vm0, %v168_v11 }
  0x9d   : > { %v281_v12 = vpop.trf.xlu1  ;;  %v243_v13 = vpop.trf.xlu0 }
  0x9e   : > { %417 = vst.msk [vmem:[%s136_s27 + $0x30] sm:$0xff] %vm183_vm0, %v281_v12  ;;  %413 = vst.msk [vmem:[%s136_s27 + $0x20] sm:$0xff] %vm183_vm0, %v243_v13 }
  0xa1   : > { %v282_v14 = vpop.trf.xlu1  ;;  %v244_v15 = vpop.trf.xlu0 }
  0xa2   : > { %418 = vst.msk [vmem:[%s136_s27 + $0x38] sm:$0xff] %vm183_vm0, %v282_v14  ;;  %414 = vst.msk [vmem:[%s136_s27 + $0x28] sm:$0xff] %vm183_vm0, %v244_v15 }
  0xa3   : > { %497 = shalt.err (!%p494_p5)
}
  0xa4   : > { %s498_s15 = scalar_lea.hbm %s646_s3, 1024  ;;  %s502_s21 = scalar_lea.hbm %s698_s1, 2048 }
  0xa5   : > { %p499_p6 = scmp.ne.s32.totalorder %s646_s3, %s498_s15  ;;  %p503_p10 = scmp.lt.s32.totalorder %s646_s3, %s698_s1 }
  0xa6   : > { %p504_p11 = scmp.lt.s32.totalorder %s502_s21, %s498_s15 }
  0xa7   : > { %p500_p7 = pnand %p499_p6, %p615_p4 }
  0xa8   : > { %p505_p12 = por %p504_p11, %p503_p10 }
  0xa9   : > { %p501_p9 = pneg %p500_p7 }
  0xab   : > { %p506_p13 = pnand %p505_p12, %p501_p9 }
  0xad   : > { %509 = shalt.err (!%p506_p13)
}
  0xae   : > { %s563_s24 = smov 128   ;;  %s564_s25 = smov 8  }
  0xaf   : > { %426 = dma.vmem_to_hbm [thread:$0]  (%p615_p4), %s648_s29, 1024, %s646_s3, %s652_s4, %s563_s24, %s563_s24, %s564_s25  }
  0xb0 PF: > { %p432_p0 = scmp.ge.s32.totalorder %s560_s11, 2  ;;  %s332_s26 = sand.u32 1, %s540_s6  }
  0xb1   : > { %s333_s27 = scalar_lea.sflag [#allocation3], %s332_s26 }
  0xb2   : > { %p429_p1 = pnand %p432_p0, %p622_p8 }
  0xb4   : > { %p430_p2 = pneg %p429_p1 }
  0xb6   : > { %535 = dma.done.wait (%p430_p2), %s333_s27, 1024  }
  0xb7   : > { %537 = vsyncadd (%p430_p2), %s333_s27, 4294966272  ;;  %s14_s11 = sadd.s32 1, %s560_s11   ;;  %s701_s6 = smov %s544_s7 }
  0xb8   : > { %p11_p3 = scmp.ge.s32.totalorder %s14_s11, 4   ;;  %s702_s7 = smov %s548_s8 }
  0xb9   : > { %s703_s8 = smov %s628_s19  ;;  %s704_s9 = smov %s556_s10 }
  0xba   : > { %s705_s10 = smov %s707_s14  ;;  %13 = sbr.rel (!%p11_p3) target bundleno = 4 (0x4), region = 65 }
  0xbf   :  { %338 = vsyncpa [#allocation3], 1 }
  0xc0   :  { %340 = vsyncpa [#allocation3 + $0x1], 1 }

</bundles_post_ra>
